<compile_context>
chip_gen: v7x
topology: tpu7x:2x2x1
jax: 0.10.0
libtpu: 0.0.40
codegen_flags: <defaults>
</compile_context>

<pallas_src>
import functools

import jax
import jax.numpy as jnp
from jax import lax
from jax.experimental import pallas as pl
from jax.experimental.pallas import tpu as pltpu


def mlp_kernel(x_ref, w1_ref, b1_ref, w2_ref, b2_ref, o_ref, *, matmul_dtype):
    # x_ref: (tb, N) native layout, w1_ref: (H, N).
    xt = x_ref[...]
    w1 = w1_ref[...]
    if matmul_dtype is not None:
        # Cast after the DMA (HBM stream unchanged) for full MXU rate on v6e/v7x.
        xt = xt.astype(matmul_dtype)
        w1 = w1.astype(matmul_dtype)
    # Contract N on both operands: (H, N) x (tb, N) -> (H, tb).  Activations come out
    # already "transposed" (features on sublanes, batch on lanes) with no extra pass.
    z1 = lax.dot_general(
        w1, xt, (((1,), (1,)), ((), ())), preferred_element_type=jnp.float32
    )
    a1 = jnp.maximum(z1 + b1_ref[...], 0.0)                     # bias + ReLU on the VPU (f32)
    # Layer 2 has one output unit: VPU multiply + sublane reduction on the XLU
    # instead of an MXU round-trip with a 1-wide result.
    z2 = jnp.sum(a1 * w2_ref[...], axis=0, keepdims=True) + b2_ref[0]   # (1, tb)
    # Sigmoid as a single EUP transcendental (exact identity, no approx reciprocal).
    o_ref[...] = 0.5 * (jnp.tanh(0.5 * z2) + 1.0)                # lane-dense store


def _round_up(x, m):
    return ((x + m - 1) // m) * m


def neural_network_forward(x, w1, b1, w2, b2, *, tb=512, matmul_dtype=None):
    """Forward of NeuralNetwork(n, h) with torch nn.Linear parameter layouts.

    x: (B, N), w1: (H, N), b1: (H,), w2: (1, H), b2: (1,)  ->  (B, 1) float32,
    matching torch.sigmoid(l2(F.relu(l1(x)))).
    """
    B, N = x.shape
    H = w1.shape[0]

    # Keep the tile a multiple of 128 lanes, but don't over-allocate when B is tiny.
    tb = min(tb, _round_up(B, 128))
    grid = pl.cdiv(B, tb)
    Bp = grid * tb

    if Bp != B:
        # Only pads the ragged tail tile; padded lanes are sliced off below.
        x = jnp.pad(x, ((0, Bp - B), (0, 0)))

    b1c = b1.reshape(H, 1)      # broadcasts over lanes inside the kernel
    w2c = w2.reshape(H, 1)      # column vector for the sublane reduce
    b2c = b2.reshape(1)         # true scalar -> SMEM

    kernel = functools.partial(mlp_kernel, matmul_dtype=matmul_dtype)

    out_t = pl.pallas_call(
        kernel,
        out_shape=jax.ShapeDtypeStruct((1, Bp), jnp.float32),
        grid=(grid,),
        in_specs=[
            pl.BlockSpec((tb, N), lambda i: (i, 0)),             # x batch tile, native layout
            pl.BlockSpec((H, N), lambda i: (0, 0)),              # W1 VMEM-resident
            pl.BlockSpec((H, 1), lambda i: (0, 0)),              # b1 VMEM-resident
            pl.BlockSpec((H, 1), lambda i: (0, 0)),              # W2 VMEM-resident
            pl.BlockSpec(memory_space=pltpu.MemorySpace.SMEM),   # b2 scalar in SMEM
        ],
        out_specs=pl.BlockSpec((1, tb), lambda i: (0, i)),       # lane-dense output store
        compiler_params=pltpu.CompilerParams(
            dimension_semantics=("parallel",),                   # megacore-shardable batch axis
        ),
        cost_estimate=pl.CostEstimate(
            flops=2 * Bp * N * H + 2 * Bp * H,
            transcendentals=Bp,
            bytes_accessed=4 * (Bp * N + H * N + 2 * H + 1 + Bp),
        ),
    )(x, w1, b1c, w2c, b2c)

    return out_t[0, :B].reshape(B, 1)


def reference_forward(x, w1, b1, w2, b2):
    a1 = jnp.maximum(x @ w1.T + b1, 0.0)
    return jax.nn.sigmoid(a1 @ w2.T + b2)


if __name__ == "__main__":
    # Small shapes, but sized so the grid has 4 batch tiles: the pipeline path (and on
    # v7x, both TensorCores) is actually exercised.
    B, N, H = 2048, 32, 32
    TB = 512

    key = jax.random.PRNGKey(0)
    kx, kw1, kb1, kw2, kb2 = jax.random.split(key, 5)

    x = jax.random.normal(kx, (B, N), dtype=jnp.float32)
    # torch nn.Linear layouts: weight (out, in), bias (out,), uniform(-1/sqrt(in), 1/sqrt(in))
    bound1 = 1.0 / (N ** 0.5)
    bound2 = 1.0 / (H ** 0.5)
    w1 = jax.random.uniform(kw1, (H, N), jnp.float32, -bound1, bound1)
    b1 = jax.random.uniform(kb1, (H,), jnp.float32, -bound1, bound1)
    w2 = jax.random.uniform(kw2, (1, H), jnp.float32, -bound2, bound2)
    b2 = jax.random.uniform(kb2, (1,), jnp.float32, -bound2, bound2)

    out = neural_network_forward(x, w1, b1, w2, b2, tb=TB)
    out = jax.block_until_ready(out)

    ref = reference_forward(x, w1, b1, w2, b2)
    assert out.shape == (B, 1)
    # f32 matmul + exact (tanh-based) sigmoid -> tight tolerance again.
    assert jnp.allclose(out, ref, atol=1e-5, rtol=1e-5), float(jnp.max(jnp.abs(out - ref)))

    print("KERNEL_OK")
</pallas_src>

<mosaic_0001>
module attributes {stable_mosaic.version = 11 : i64} {
  func.func @mlp_kernel(%arg0: i32, %arg1: memref<512x32xf32, #tpu.memory_space<vmem>>, %arg2: memref<32x32xf32, #tpu.memory_space<vmem>>, %arg3: memref<32x1xf32, #tpu.memory_space<vmem>>, %arg4: memref<32x1xf32, #tpu.memory_space<vmem>>, %arg5: memref<1xf32, #tpu.memory_space<smem>>, %arg6: memref<1x512xf32, #tpu.memory_space<vmem>>) attributes {dimension_semantics = [#tpu.dimension_semantics<parallel>], iteration_bounds = array<i64: 4>, scalar_prefetch = 0 : i64, scratch_operands = 0 : i64, tpu.core_type = #tpu.core_type<tc>, window_params = [{transform_indices = @transform_0, window_bounds = array<i64: 512, 32>}, {pipeline_mode = #tpu.pipeline_mode<synchronous>, transform_indices = @transform_1, window_bounds = array<i64: 32, 32>}, {pipeline_mode = #tpu.pipeline_mode<synchronous>, transform_indices = @transform_2, window_bounds = array<i64: 32, 1>}, {pipeline_mode = #tpu.pipeline_mode<synchronous>, transform_indices = @transform_3, window_bounds = array<i64: 32, 1>}, {transform_indices = @transform_4, window_bounds = array<i64: 1>}, {transform_indices = @transform_5, window_bounds = array<i64: 1, 512>}]} {
    %c0 = arith.constant 0 : index
    %c0_0 = arith.constant 0 : index
    %0 = vector.load %arg1[%c0, %c0_0] : memref<512x32xf32, #tpu.memory_space<vmem>>, vector<512x32xf32>
    %c0_1 = arith.constant 0 : index
    %c0_2 = arith.constant 0 : index
    %1 = vector.load %arg2[%c0_1, %c0_2] : memref<32x32xf32, #tpu.memory_space<vmem>>, vector<32x32xf32>
    %cst = arith.constant dense<0.000000e+00> : vector<32x512xf32>
    %2 = tpu.matmul %1, %0, %cst {dimension_numbers = #tpu.dot_dimension_numbers<[1], [1], [0], [0], [0, 0, 1, 0], [], []>} : vector<32x32xf32>, vector<512x32xf32>, vector<32x512xf32> -> vector<32x512xf32>
    %c0_3 = arith.constant 0 : index
    %c0_4 = arith.constant 0 : index
    %3 = vector.load %arg3[%c0_3, %c0_4] : memref<32x1xf32, #tpu.memory_space<vmem>>, vector<32x1xf32>
    %4 = vector.broadcast %3 : vector<32x1xf32> to vector<32x512xf32>
    %5 = arith.addf %2, %4 : vector<32x512xf32>
    %cst_5 = arith.constant 0.000000e+00 : f32
    %6 = vector.broadcast %cst_5 : f32 to vector<32x512xf32>
    %7 = arith.maximumf %5, %6 : vector<32x512xf32>
    %c0_6 = arith.constant 0 : index
    %c0_7 = arith.constant 0 : index
    %8 = vector.load %arg4[%c0_6, %c0_7] : memref<32x1xf32, #tpu.memory_space<vmem>>, vector<32x1xf32>
    %9 = vector.broadcast %8 : vector<32x1xf32> to vector<32x512xf32>
    %10 = arith.mulf %7, %9 : vector<32x512xf32>
    %cst_8 = arith.constant dense<0.000000e+00> : vector<512xf32>
    %11 = vector.multi_reduction <add>, %10, %cst_8 [0] : vector<32x512xf32> to vector<512xf32>
    %12 = vector.shape_cast %11 : vector<512xf32> to vector<1x512xf32>
    %c0_9 = arith.constant 0 : index
    %13 = memref.load %arg5[%c0_9] : memref<1xf32, #tpu.memory_space<smem>>
    %14 = vector.broadcast %13 : f32 to vector<1x512xf32>
    %15 = arith.addf %12, %14 : vector<1x512xf32>
    %cst_10 = arith.constant 5.000000e-01 : f32
    %16 = vector.broadcast %cst_10 : f32 to vector<1x512xf32>
    %17 = arith.mulf %16, %15 : vector<1x512xf32>
    %18 = math.tanh %17 : vector<1x512xf32>
    %cst_11 = arith.constant 1.000000e+00 : f32
    %19 = vector.broadcast %cst_11 : f32 to vector<1x512xf32>
    %20 = arith.addf %18, %19 : vector<1x512xf32>
    %cst_12 = arith.constant 5.000000e-01 : f32
    %21 = vector.broadcast %cst_12 : f32 to vector<1x512xf32>
    %22 = arith.mulf %21, %20 : vector<1x512xf32>
    %c0_13 = arith.constant 0 : index
    %c0_14 = arith.constant 0 : index
    %23 = vector.load %arg6[%c0_13, %c0_14] : memref<1x512xf32, #tpu.memory_space<vmem>>, vector<1x512xf32>
    tpu.vector_store %arg6[%c0_13, %c0_14], %22 {strides = array<i32>} : memref<1x512xf32, #tpu.memory_space<vmem>>, vector<1x512xf32>,
    return
  }
  func.func @transform_0(%arg0: i32) -> (i32, i32) {
    %c0_i32 = arith.constant 0 : i32
    %c0_i32_0 = arith.constant 0 : i32
    return %arg0, %c0_i32 : i32, i32
  }
  func.func @transform_1(%arg0: i32) -> (i32, i32) {
    %c0_i32 = arith.constant 0 : i32
    %c0_i32_0 = arith.constant 0 : i32
    %c0_i32_1 = arith.constant 0 : i32
    return %c0_i32, %c0_i32_0 : i32, i32
  }
  func.func @transform_2(%arg0: i32) -> (i32, i32) {
    %c0_i32 = arith.constant 0 : i32
    %c0_i32_0 = arith.constant 0 : i32
    %c0_i32_1 = arith.constant 0 : i32
    return %c0_i32, %c0_i32_0 : i32, i32
  }
  func.func @transform_3(%arg0: i32) -> (i32, i32) {
    %c0_i32 = arith.constant 0 : i32
    %c0_i32_0 = arith.constant 0 : i32
    %c0_i32_1 = arith.constant 0 : i32
    return %c0_i32, %c0_i32_0 : i32, i32
  }
  func.func @transform_4(%arg0: i32) -> i32 {
    %c0_i32 = arith.constant 0 : i32
    %c0_i32_0 = arith.constant 0 : i32
    return %c0_i32 : i32
  }
  func.func @transform_5(%arg0: i32) -> (i32, i32) {
    %c0_i32 = arith.constant 0 : i32
    %c0_i32_0 = arith.constant 0 : i32
    return %c0_i32, %arg0 : i32, i32
  }
}

</mosaic_0001>

<bundles_post_ra>
// kernel: tpu_custom_call.1
= control target key start
LH: loop header
LB: loop body
LE: loop exit
PB: predicated region body
PF: predicated region fallthrough
CT: control target
= control target key end

     0   :  { %s1629_s0 = inlined_call_operand.vmem [shape: f32[2048,32], index: 0, kind: input, shape index: {}]   ;;  %s1630_s1 = inlined_call_operand.vmem [shape: f32[32,32], index: 1, kind: input, shape index: {}]   ;;  %s1631_s2 = inlined_call_operand.vmem [shape: f32[32,1], index: 2, kind: input, shape index: {}]   ;;  %s1632_s3 = inlined_call_operand.vmem [shape: f32[32,1], index: 3, kind: input, shape index: {}]   ;;  %s1633_s4 = inlined_call_operand.<no memory space> [shape: f32[1], index: 4, kind: input, shape index: {}]   ;;  %s1634_s5 = inlined_call_operand.hbm [shape: f32[1,2048], index: 5, kind: output, shape index: {}]  }
   0x1   :  { %10 = sst [smem:[#allocation2]] %s1633_s4 }
   0x2   :  { %11 = vsyncpa [#allocation4], 0 }
   0x3   :  { %13 = vsyncpa [#allocation4 + $0x1], 0  ;;  %s1336_s20 = smov 0   ;;  %s1338_s21 = smov 0  }
   0x4   :  { %s1340_s22 = smov 0   ;;  %s1342_s23 = smov 0  }
   0x5 LB: > { %s923_s4 = sadd.s32 4294967295, %s1298_s23   ;;  %s924_s24 = sadd.s32 4294967294, %s1298_s23   ;;  %s1298_s23 = sphi %s1342_s23, %s1642_s23   ;;  %s1294_s22 = sphi %s1340_s22, %s1641_s22   ;;  %s1290_s21 = sphi %s1338_s21, %s1640_s21   ;;  %s1286_s20 = sphi %s1336_s20, %s1639_s20  }
   0x6   : > { %s1359_s25 = sadd.s32 1, %s1298_s23   ;;  %s136_s26 = sadd.s32 1, %s1294_s22 }
   0x7   : > { %s133_s27 = ssub.s32 %s1298_s23, %s1359_s25  ;;  %p146_p0 = scmp.ne.s32.totalorder %s1294_s22, %s1290_s21 }
   0x8   : > { %p134_p1 = scmp.eq.s32.totalorder %s133_s27, 0  ;;  %p147_p2 = scmp.eq.s32.totalorder %s923_s4, 3 }
   0x9   : > { %p152_p3 = scmp.ne.s32.totalorder %s1290_s21, %s1286_s20  ;;  %p153_p4 = scmp.eq.s32.totalorder %s924_s24, 3 }
   0xa   : > { %s1369_s28 = scalar_select %p134_p1, %s1294_s22, %s136_s26  }
   0xb   : > { %p1371_p5 = por %p147_p2, %p146_p0  ;;  %p1375_p6 = por %p153_p4, %p152_p3 }
   0xc   : > { %p927_p7 = scmp.ge.s32.totalorder %s1298_s23, 1  ;;  %p192_p8 = scmp.lt.s32.totalorder %s1298_s23, 5 }
   0xe   : > { %p193_p9 = pnand %p927_p7, %p192_p8 }
   0xf   : > { %s1381_s6 = sshll.u32 (!%p193_p9), %s923_s4, 6  ;;  %vm319_vm0 = vcmask (!%p193_p9), 261120   ;;  %v1386_v0 = vld [vmem:[%s1630_s1] sm:$0xff] (!%p193_p9)  ;;  %v1300_v2 = vmov (!%p193_p9), 0   ;;  %v297_v3 = vld [vmem:[%s1631_s2 + $0x10] sm:$0xff] (!%p193_p9)  ;;  %v296_v4 = vld [vmem:[%s1631_s2 + $0x8] sm:$0xff] (!%p193_p9) }
  0x10   : > { %196 = sbr.rel (%p193_p9) target bundleno = 383 (0x17f), region = 40  ;;  %p221_p10 = scmp.lt.s32.totalorder (!%p193_p9), %s1381_s6, 255  ;;  %1041 = vmatprep.mubr.msk.f32.mxu0 (!%p193_p9), %vm319_vm0, %v1386_v0  ;;  %1081 = vmatprep.mubr.msk.f32.mxu1 (!%p193_p9), %vm319_vm0, %v1386_v0  ;;  %v295_v1 = vld [vmem:[%s1631_s2] sm:$0xff] (!%p193_p9)  ;;  %v298_v5 = vld [vmem:[%s1631_s2 + $0x18] sm:$0xff] (!%p193_p9)  ;;  %vm1413_vm1 = vmpackc.low (!%p193_p9), %vm319_vm0, %vm319_vm0 }
  0x11   : > { %1226 = vset.pattern.permute.xlu0 (!%p193_p9), %v1300_v2  ;;  %1227 = vset.pattern.permute.xlu1 (!%p193_p9), %v1300_v2  ;;  %v718_v10 = vld [vmem:[%s1632_s3] sm:$0xff] (!%p193_p9)  ;;  %v719_v26 = vld [vmem:[%s1632_s3 + $0x8] sm:$0xff] (!%p193_p9)  ;;  %v720_v27 = vld [vmem:[%s1632_s3 + $0x10] sm:$0xff] (!%p193_p9)  ;;  %s794_s19 = sld [smem:[#allocation2]] (!%p193_p9)  ;;  %s217_s4 = sand.u32 (!%p193_p9), 1, %s1290_s21  }
  0x12   : > { %301 = vperm.xlu0 (!%p193_p9), %1226, %v295_v1   ;;  %311 = vperm.xlu1 (!%p193_p9), %1227, %v297_v3   ;;  %v721_v37 = vld [vmem:[%s1632_s3 + $0x18] sm:$0xff] (!%p193_p9)  ;;  %s1587_s9 = scalar_lea.hbm (!%p193_p9), %s1634_s5, %s1381_s6  ;;  %s851_s10 = scalar_lea.sflag (!%p193_p9), [#allocation4], %s217_s4 }
  0x13   : > { %s1302_s12 = smov (!%p193_p9), [#allocation3]  }
  0x16   : > { %306 = vperm.xlu0 (!%p193_p9), %1226, %v296_v4   ;;  %316 = vperm.xlu1 (!%p193_p9), %1227, %v298_v5  }
  0x17   : > { %s222_s13 = scalar_select %p221_p10, %s1381_s6, 255 }
  0x19   : > { %s930_s18 = sshll.u32 %s222_s13, 3  ;;  %s1240_s13 = sshll.u32 %s1302_s12, 4  ;;  %s1241_s13 = int_to_ptr.vmem [resolvable:$false] %s1240_s13 }
  0x1a   : > { %s1409_s24 = scalar_lea.vmem %s1629_s0, %s930_s18  ;;  %724 = vperm.xlu0 %1226, %v718_v10   ;;  %729 = vperm.xlu1 %1227, %v719_v26   ;;  %s1242_s14 = scalar_lea.vmem %s1241_s13, 128 }
  0x1b   : > { %v243_v7 = vld [vmem:[%s1409_s24 + $0x80] sm:$0xff]  ;;  %v244_v8 = vld [vmem:[%s1409_s24 + $0x88] sm:$0xff]  ;;  %v245_v19 = vld [vmem:[%s1409_s24 + $0x90] sm:$0xff] }
  0x1c   : > { %v275_v9 = vld [vmem:[%s1409_s24 + $0x180] sm:$0xff]  ;;  %v1089_v11 = vpack.c.bf16 %v244_v8, %v243_v7  ;;  %v276_v12 = vld [vmem:[%s1409_s24 + $0x188] sm:$0xff]  ;;  %v246_v21 = vld [vmem:[%s1409_s24 + $0x98] sm:$0xff] }
  0x1d   : > { %v227_v13 = vld [vmem:[%s1409_s24] sm:$0xff]  ;;  %v228_v14 = vld [vmem:[%s1409_s24 + $0x8] sm:$0xff]  ;;  %v1137_v15 = vpack.c.bf16 %v276_v12, %v275_v9  ;;  %v277_v22 = vld [vmem:[%s1409_s24 + $0x190] sm:$0xff]  ;;  %v1095_v24 = vpack.c.bf16 %v246_v21, %v245_v19 }
  0x1e   : > { %v1092_v16 = vpack.c.bf16 %v228_v14, %v227_v13  ;;  %v259_v17 = vld [vmem:[%s1409_s24 + $0x100] sm:$0xff]  ;;  %v260_v18 = vld [vmem:[%s1409_s24 + $0x108] sm:$0xff]  ;;  %1091 = vmatprep.subr.msk.bf16.mxu0 %vm1413_vm1, %v1089_v11  ;;  %v278_v23 = vld [vmem:[%s1409_s24 + $0x198] sm:$0xff]  ;;  %734 = vperm.xlu0 %1226, %v720_v27  }
  0x1f   : > { %v1140_v20 = vpack.c.bf16 %v260_v18, %v259_v17  ;;  %1139 = vmatprep.subr.msk.bf16.mxu1 %vm1413_vm1, %v1137_v15  ;;  %v1143_v25 = vpack.c.bf16 %v278_v23, %v277_v22  ;;  %v229_v28 = vld [vmem:[%s1409_s24 + $0x10] sm:$0xff]  ;;  %v230_v29 = vld [vmem:[%s1409_s24 + $0x18] sm:$0xff]  ;;  %v247_v32 = vld [vmem:[%s1409_s24 + $0xa0] sm:$0xff]  ;;  %739 = vperm.xlu1 %1227, %v721_v37  }
  0x20   : > { %1094 = vmatpush3.bf16.xpose.msk.msra.mxu0 %vm1413_vm1, %v1092_v16  ;;  %v261_v30 = vld [vmem:[%s1409_s24 + $0x110] sm:$0xff]  ;;  %v262_v31 = vld [vmem:[%s1409_s24 + $0x118] sm:$0xff]  ;;  %v248_v33 = vld [vmem:[%s1409_s24 + $0xa8] sm:$0xff]  ;;  %v1098_v36 = vpack.c.bf16 %v230_v29, %v229_v28 }
  0x21   : > { %1142 = vmatpush3.bf16.xpose.msk.msra.mxu1 %vm1413_vm1, %v1140_v20  ;;  %1097 = vmatprep.subr.msk.bf16.mxu0 %vm1413_vm1, %v1095_v24  ;;  %v279_v34 = vld [vmem:[%s1409_s24 + $0x1a0] sm:$0xff]  ;;  %v280_v35 = vld [vmem:[%s1409_s24 + $0x1a8] sm:$0xff]  ;;  %v1146_v38 = vpack.c.bf16 %v262_v31, %v261_v30  ;;  %v1101_v39 = vpack.c.bf16 %v248_v33, %v247_v32  ;;  %v249_v45 = vld [vmem:[%s1409_s24 + $0xb0] sm:$0xff] }
  0x22   : > { %1145 = vmatprep.subr.msk.bf16.mxu1 %vm1413_vm1, %v1143_v25  ;;  %v1149_v40 = vpack.c.bf16 %v280_v35, %v279_v34  ;;  %v231_v41 = vld [vmem:[%s1409_s24 + $0x20] sm:$0xff]  ;;  %v232_v42 = vld [vmem:[%s1409_s24 + $0x28] sm:$0xff]  ;;  %v250_v46 = vld [vmem:[%s1409_s24 + $0xb8] sm:$0xff] }
  0x23   : > { %v263_v43 = vld [vmem:[%s1409_s24 + $0x120] sm:$0xff]  ;;  %v264_v44 = vld [vmem:[%s1409_s24 + $0x128] sm:$0xff]  ;;  %v281_v47 = vld [vmem:[%s1409_s24 + $0x1b0] sm:$0xff]  ;;  %v1104_v49 = vpack.c.bf16 %v232_v42, %v231_v41  ;;  %v1107_v51 = vpack.c.bf16 %v250_v46, %v249_v45 }
  0x24   : > { %v282_v48 = vld [vmem:[%s1409_s24 + $0x1b8] sm:$0xff]  ;;  %v1152_v50 = vpack.c.bf16 %v264_v44, %v263_v43  ;;  %v233_v53 = vld [vmem:[%s1409_s24 + $0x30] sm:$0xff]  ;;  %v251_v57 = vld [vmem:[%s1409_s24 + $0xc0] sm:$0xff] }
  0x25   : > { %v1155_v52 = vpack.c.bf16 %v282_v48, %v281_v47  ;;  %v234_v54 = vld [vmem:[%s1409_s24 + $0x38] sm:$0xff]  ;;  %v265_v55 = vld [vmem:[%s1409_s24 + $0x130] sm:$0xff]  ;;  %v252_v58 = vld [vmem:[%s1409_s24 + $0xc8] sm:$0xff] }
  0x26   : > { %v266_v56 = vld [vmem:[%s1409_s24 + $0x138] sm:$0xff]  ;;  %v283_v59 = vld [vmem:[%s1409_s24 + $0x1c0] sm:$0xff]  ;;  %v284_v60 = vld [vmem:[%s1409_s24 + $0x1c8] sm:$0xff]  ;;  %v1110_v61 = vpack.c.bf16 %v234_v54, %v233_v53  ;;  %v1113_v63 = vpack.c.bf16 %v252_v58, %v251_v57 }
  0x27   : > { %v1158_v62 = vpack.c.bf16 %v266_v56, %v265_v55  ;;  %v1161_v1 = vpack.c.bf16 %v284_v60, %v283_v59  ;;  %v235_v2 = vld [vmem:[%s1409_s24 + $0x40] sm:$0xff]  ;;  %v236_v3 = vld [vmem:[%s1409_s24 + $0x48] sm:$0xff]  ;;  %v253_v7 = vld [vmem:[%s1409_s24 + $0xd0] sm:$0xff] }
  0x28   : > { %1100 = vmatpush3.bf16.xpose.msk.msra.mxu0 %vm1413_vm1, %v1098_v36  ;;  %v267_v4 = vld [vmem:[%s1409_s24 + $0x140] sm:$0xff]  ;;  %v268_v5 = vld [vmem:[%s1409_s24 + $0x148] sm:$0xff]  ;;  %v254_v8 = vld [vmem:[%s1409_s24 + $0xd8] sm:$0xff]  ;;  %v1116_v11 = vpack.c.bf16 %v236_v3, %v235_v2 }
  0x29   : > { %1148 = vmatpush3.bf16.xpose.msk.msra.mxu1 %vm1413_vm1, %v1146_v38  ;;  %1103 = vmatprep.subr.msk.bf16.mxu0 %vm1413_vm1, %v1101_v39  ;;  %v285_v9 = vld [vmem:[%s1409_s24 + $0x1d0] sm:$0xff]  ;;  %v286_v10 = vld [vmem:[%s1409_s24 + $0x1d8] sm:$0xff]  ;;  %v1164_v12 = vpack.c.bf16 %v268_v5, %v267_v4  ;;  %v1119_v13 = vpack.c.bf16 %v254_v8, %v253_v7  ;;  %v255_v19 = vld [vmem:[%s1409_s24 + $0xe0] sm:$0xff] }
  0x2a   : > { %1151 = vmatprep.subr.msk.bf16.mxu1 %vm1413_vm1, %v1149_v40  ;;  %v1167_v14 = vpack.c.bf16 %v286_v10, %v285_v9  ;;  %v237_v15 = vld [vmem:[%s1409_s24 + $0x50] sm:$0xff]  ;;  %v238_v16 = vld [vmem:[%s1409_s24 + $0x58] sm:$0xff]  ;;  %v256_v20 = vld [vmem:[%s1409_s24 + $0xe8] sm:$0xff] }
  0x2b   : > { %v269_v17 = vld [vmem:[%s1409_s24 + $0x150] sm:$0xff]  ;;  %v270_v18 = vld [vmem:[%s1409_s24 + $0x158] sm:$0xff]  ;;  %v287_v21 = vld [vmem:[%s1409_s24 + $0x1e0] sm:$0xff]  ;;  %v1122_v23 = vpack.c.bf16 %v238_v16, %v237_v15  ;;  %v1125_v25 = vpack.c.bf16 %v256_v20, %v255_v19 }
  0x2c   : > { %v288_v22 = vld [vmem:[%s1409_s24 + $0x1e8] sm:$0xff]  ;;  %v1170_v24 = vpack.c.bf16 %v270_v18, %v269_v17  ;;  %v239_v27 = vld [vmem:[%s1409_s24 + $0x60] sm:$0xff]  ;;  %v257_v31 = vld [vmem:[%s1409_s24 + $0xf0] sm:$0xff] }
  0x2d   : > { %v1173_v26 = vpack.c.bf16 %v288_v22, %v287_v21  ;;  %v240_v28 = vld [vmem:[%s1409_s24 + $0x68] sm:$0xff]  ;;  %v271_v29 = vld [vmem:[%s1409_s24 + $0x160] sm:$0xff]  ;;  %v258_v32 = vld [vmem:[%s1409_s24 + $0xf8] sm:$0xff] }
  0x2e   : > { %v272_v30 = vld [vmem:[%s1409_s24 + $0x168] sm:$0xff]  ;;  %v289_v33 = vld [vmem:[%s1409_s24 + $0x1f0] sm:$0xff]  ;;  %v290_v34 = vld [vmem:[%s1409_s24 + $0x1f8] sm:$0xff]  ;;  %v1128_v35 = vpack.c.bf16 %v240_v28, %v239_v27  ;;  %v1131_v37 = vpack.c.bf16 %v258_v32, %v257_v31 }
  0x2f   : > { %v1176_v36 = vpack.c.bf16 %v272_v30, %v271_v29  ;;  %v1179_v38 = vpack.c.bf16 %v290_v34, %v289_v33  ;;  %v241_v39 = vld [vmem:[%s1409_s24 + $0x70] sm:$0xff]  ;;  %v242_v40 = vld [vmem:[%s1409_s24 + $0x78] sm:$0xff]  ;;  %v292_v45 = vld [vmem:[%s1630_s1 + $0x8] sm:$0xff] }
  0x30   : > { %1106 = vmatpush3.bf16.xpose.msk.msra.mxu0 %vm1413_vm1, %v1104_v49  ;;  %v273_v41 = vld [vmem:[%s1409_s24 + $0x170] sm:$0xff]  ;;  %v274_v42 = vld [vmem:[%s1409_s24 + $0x178] sm:$0xff]  ;;  %v1134_v43 = vpack.c.bf16 %v242_v40, %v241_v39  ;;  %s928_s24 = sshll.u32 %s217_s4, 2 }
  0x31   : > { %1154 = vmatpush3.bf16.xpose.msk.msra.mxu1 %vm1413_vm1, %v1152_v50  ;;  %1109 = vmatprep.subr.msk.bf16.mxu0 %vm1413_vm1, %v1107_v51  ;;  %v1182_v44 = vpack.c.bf16 %v274_v42, %v273_v41  ;;  %v293_v46 = vld [vmem:[%s1630_s1 + $0x10] sm:$0xff]  ;;  %s219_s26 = scalar_lea.vmem [#allocation3], %s928_s24 }
  0x32   : > { %1157 = vmatprep.subr.msk.bf16.mxu1 %vm1413_vm1, %v1155_v52  ;;  %s865_s27 = sshll.u32 %s219_s26, 4  ;;  %s1589_s27 = int_to_ptr.vmem [resolvable:$true] %s865_s27 }
  0x33   : > { %s1236_s11 = scalar_lea.vmem %s1589_s27, 64  ;;  %p1243_p0 = scmp.lt.s32.totalorder %s1589_s27, %s1241_s13 }
  0x34   : > { %p1237_p11 = scmp.ne.s32.totalorder %s1589_s27, %s1236_s11  ;;  %p1244_p1 = scmp.lt.s32.totalorder %s1242_s14, %s1236_s11 }
  0x36   : > { %p1238_p12 = pnand %p1237_p11, %p1371_p5  ;;  %p1245_p2 = por %p1244_p1, %p1243_p0 }
  0x38   : > { %1112 = vmatpush3.bf16.xpose.msk.msra.mxu0 %vm1413_vm1, %v1110_v61  ;;  %p1239_p13 = pneg %p1238_p12 }
  0x39   : > { %1160 = vmatpush3.bf16.xpose.msk.msra.mxu1 %vm1413_vm1, %v1158_v62  ;;  %1115 = vmatprep.subr.msk.bf16.mxu0 %vm1413_vm1, %v1113_v63 }
  0x3a   : > { %1163 = vmatprep.subr.msk.bf16.mxu1 %vm1413_vm1, %v1161_v1  ;;  %p1246_p3 = pnand %p1245_p2, %p1239_p13 }
  0x40   : > { %1118 = vmatpush3.bf16.xpose.msk.msra.mxu0 %vm1413_vm1, %v1116_v11 }
  0x41   : > { %1166 = vmatpush3.bf16.xpose.msk.msra.mxu1 %vm1413_vm1, %v1164_v12  ;;  %1121 = vmatprep.subr.msk.bf16.mxu0 %vm1413_vm1, %v1119_v13 }
  0x42   : > { %1169 = vmatprep.subr.msk.bf16.mxu1 %vm1413_vm1, %v1167_v14 }
  0x48   : > { %1124 = vmatpush3.bf16.xpose.msk.msra.mxu0 %vm1413_vm1, %v1122_v23 }
  0x49   : > { %1172 = vmatpush3.bf16.xpose.msk.msra.mxu1 %vm1413_vm1, %v1170_v24  ;;  %1127 = vmatprep.subr.msk.bf16.mxu0 %vm1413_vm1, %v1125_v25 }
  0x4a   : > { %1175 = vmatprep.subr.msk.bf16.mxu1 %vm1413_vm1, %v1173_v26 }
  0x50   : > { %1130 = vmatpush3.bf16.xpose.msk.msra.mxu0 %vm1413_vm1, %v1128_v35 }
  0x51   : > { %1178 = vmatpush3.bf16.xpose.msk.msra.mxu1 %vm1413_vm1, %v1176_v36  ;;  %1133 = vmatprep.subr.msk.bf16.mxu0 %vm1413_vm1, %v1131_v37 }
  0x52   : > { %1181 = vmatprep.subr.msk.bf16.mxu1 %vm1413_vm1, %v1179_v38 }
  0x58   : > { %1136 = vmatpush3.bf16.xpose.msk.msra.mxu0 %vm1413_vm1, %v1134_v43 }
  0x59   : > { %1184 = vmatpush3.bf16.xpose.msk.msra.mxu1 %vm1413_vm1, %v1182_v44 }
  0x5f   : > { %1042 = vmatmul.mubr.msk.f32.vlgmr.msra.gmra.mrb[0].mxu0 %vm319_vm0, %v1386_v0 }
  0x60   : > { %1082 = vmatmul.mubr.msk.f32.vlgmr.msra.gmra.mrb[0].mxu1 %vm319_vm0, %v1386_v0  ;;  %1043 = vmatprep.mubr.msk.f32.mxu0 %vm319_vm0, %v292_v45  ;;  %v294_v0 = vld [vmem:[%s1630_s1 + $0x18] sm:$0xff] }
  0x61   : > { %1083 = vmatprep.mubr.msk.f32.mxu1 %vm319_vm0, %v292_v45 }
  0x63   : > { %1044 = vmatmul.mubr.msk.f32.gmra.mrb[2].mxu0 %vm319_vm0, %v292_v45 }
  0x64   : > { %1084 = vmatmul.mubr.msk.f32.gmra.mrb[2].mxu1 %vm319_vm0, %v292_v45  ;;  %1045 = vmatprep.mubr.msk.f32.mxu0 %vm319_vm0, %v293_v46 }
  0x65   : > { %1085 = vmatprep.mubr.msk.f32.mxu1 %vm319_vm0, %v293_v46 }
  0x67   : > { %1046 = vmatmul.mubr.msk.f32.gmra.mrb[4].mxu0 %vm319_vm0, %v293_v46 }
  0x68   : > { %1086 = vmatmul.mubr.msk.f32.gmra.mrb[4].mxu1 %vm319_vm0, %v293_v46  ;;  %1047 = vmatprep.mubr.msk.f32.mxu0 %vm319_vm0, %v294_v0 }
  0x69   : > { %1087 = vmatprep.mubr.msk.f32.mxu1 %vm319_vm0, %v294_v0 }
  0x6b   : > { %1048 = vmatmul.mubr.msk.f32.gmra.mrb[6].mxu0 %vm319_vm0, %v294_v0 }
  0x6c   : > { %1088 = vmatmul.mubr.msk.f32.gmra.mrb[6].mxu1 %vm319_vm0, %v294_v0 }
  0x91   : > { %v302_v6 = vpop.permute.xlu0 %301  ;;  %v312_v47 = vpop.permute.xlu1 %311 }
  0x95   : > { %v307_v48 = vpop.permute.xlu0 %306  ;;  %v317_v53 = vpop.permute.xlu1 %316 }
  0x99   : > { %v725_v3 = vpop.permute.xlu0 %724  ;;  %v730_v12 = vpop.permute.xlu1 %729 }
  0x9d   : > { %v735_v32 = vpop.permute.xlu0 %734 }
 0x132   : > { %v590_v49 = vpop.f32.mrb[0].mxu0 }
 0x133   : > { %v591_v50 = vadd.f32 %v590_v49, %v302_v6  ;;  %v679_v51 = vpop.f32.mrb[0].mxu1  ;;  %v592_v52 = vpop.f32.mrb[1].mxu0 }
 0x134   : > { %v680_v54 = vadd.f32 %v679_v51, %v302_v6  ;;  %v593_v55 = vadd.f32 %v592_v52, %v302_v6  ;;  %v681_v56 = vpop.f32.mrb[1].mxu1  ;;  %v740_v51 = vpop.permute.xlu1 %739 }
 0x135   : > { %v702_v57 = vmax.f32 %v591_v50, 0.0  ;;  %v682_v58 = vadd.f32 %v681_v56, %v302_v6 }
 0x136   : > { %v704_v59 = vmax.f32 %v680_v54, 0.0  ;;  %v703_v60 = vmax.f32 %v593_v55, 0.0  ;;  %v596_v61 = vpop.f32.mrb[2].mxu0 }
 0x137   : > { %v705_v62 = vmax.f32 %v682_v58, 0.0  ;;  %v597_v63 = vadd.f32 %v596_v61, %v307_v48  ;;  %v685_v1 = vpop.f32.mrb[2].mxu1  ;;  %v598_v2 = vpop.f32.mrb[3].mxu0  ;;  %v742_v8 = vmul.f32 %v725_v3, %v702_v57 }
 0x138   : > { %v686_v4 = vadd.f32 %v685_v1, %v307_v48  ;;  %v599_v5 = vadd.f32 %v598_v2, %v307_v48  ;;  %v687_v7 = vpop.f32.mrb[3].mxu1  ;;  %v744_v11 = vmul.f32 %v725_v3, %v704_v59  ;;  %v743_v13 = vmul.f32 %v725_v3, %v703_v60 }
 0x139   : > { %v706_v9 = vmax.f32 %v597_v63, 0.0  ;;  %v688_v10 = vadd.f32 %v687_v7, %v307_v48  ;;  %v745_v17 = vmul.f32 %v725_v3, %v705_v62 }
 0x13a   : > { %v708_v14 = vmax.f32 %v686_v4, 0.0  ;;  %v707_v15 = vmax.f32 %v599_v5, 0.0  ;;  %v602_v16 = vpop.f32.mrb[4].mxu0 }
 0x13b   : > { %v746_v18 = vmul.f32 %v730_v12, %v706_v9  ;;  %v709_v19 = vmax.f32 %v688_v10, 0.0  ;;  %v603_v20 = vadd.f32 %v602_v16, %v312_v47  ;;  %v691_v21 = vpop.f32.mrb[4].mxu1  ;;  %v604_v22 = vpop.f32.mrb[5].mxu0 }
 0x13c   : > { %v748_v23 = vmul.f32 %v730_v12, %v708_v14  ;;  %v747_v24 = vmul.f32 %v730_v12, %v707_v15  ;;  %v692_v25 = vadd.f32 %v691_v21, %v312_v47  ;;  %v605_v26 = vadd.f32 %v604_v22, %v312_v47  ;;  %v693_v27 = vpop.f32.mrb[5].mxu1 }
 0x13d   : > { %v758_v28 = vadd.f32 %v746_v18, %v742_v8  ;;  %v749_v29 = vmul.f32 %v730_v12, %v709_v19  ;;  %v710_v30 = vmax.f32 %v603_v20, 0.0  ;;  %v694_v31 = vadd.f32 %v693_v27, %v312_v47 }
 0x13e   : > { %v776_v33 = vadd.f32 %v748_v23, %v744_v11  ;;  %v767_v34 = vadd.f32 %v747_v24, %v743_v13  ;;  %v712_v35 = vmax.f32 %v692_v25, 0.0  ;;  %v711_v36 = vmax.f32 %v605_v26, 0.0  ;;  %v608_v37 = vpop.f32.mrb[6].mxu0 }
 0x13f   : > { %v785_v38 = vadd.f32 %v749_v29, %v745_v17  ;;  %v750_v39 = vmul.f32 %v735_v32, %v710_v30  ;;  %v713_v40 = vmax.f32 %v694_v31, 0.0  ;;  %v609_v41 = vadd.f32 %v608_v37, %v317_v53  ;;  %v697_v42 = vpop.f32.mrb[6].mxu1  ;;  %v610_v43 = vpop.f32.mrb[7].mxu0 }
 0x140   : > { %v752_v44 = vmul.f32 %v735_v32, %v712_v35  ;;  %v751_v45 = vmul.f32 %v735_v32, %v711_v36  ;;  %v698_v46 = vadd.f32 %v697_v42, %v317_v53  ;;  %v611_v0 = vadd.f32 %v610_v43, %v317_v53  ;;  %v699_v6 = vpop.f32.mrb[7].mxu1 }
 0x141   : > { %v759_v48 = vadd.f32 %v758_v28, %v750_v39  ;;  %v753_v49 = vmul.f32 %v735_v32, %v713_v40  ;;  %v714_v47 = vmax.f32 %v609_v41, 0.0  ;;  %v700_v50 = vadd.f32 %v699_v6, %v317_v53 }
 0x142   : > { %v777_v52 = vadd.f32 %v776_v33, %v752_v44  ;;  %v768_v54 = vadd.f32 %v767_v34, %v751_v45  ;;  %v716_v55 = vmax.f32 %v698_v46, 0.0  ;;  %v715_v56 = vmax.f32 %v611_v0, 0.0 }
 0x143   : > { %v786_v57 = vadd.f32 %v785_v38, %v753_v49  ;;  %v754_v58 = vmul.f32 %v740_v51, %v714_v47  ;;  %v717_v59 = vmax.f32 %v700_v50, 0.0  ;;  %v795_v21 = vstv %s794_s19 }
 0x144   : > { %v756_v60 = vmul.f32 %v740_v51, %v716_v55  ;;  %v755_v61 = vmul.f32 %v740_v51, %v715_v56  ;;  %v1301_v37 = vmov 1966171168   ;;  %v825_v39 = vlaneseq }
 0x145   : > { %v760_v62 = vadd.f32 %v759_v48, %v754_v58  ;;  %v757_v63 = vmul.f32 %v740_v51, %v717_v59  ;;  %v823_v38 = vunpack.c.l.s4 %v1301_v37 }
 0x146   : > { %v778_v1 = vadd.f32 %v777_v52, %v756_v60  ;;  %v769_v2 = vadd.f32 %v768_v54, %v755_v61  ;;  %v826_v44 = vshrl.u32 %v825_v39, 7  ;;  %vm847_vm2 = vcmp.lt.s32.totalorder %v825_v39, 512 }
 0x147   : > { %v761_v3 = vrot.slane %v760_v62, 4  ;;  %v787_v4 = vadd.f32 %v786_v57, %v757_v63  ;;  %v824_v43 = vunpack.c.0.s8 %v823_v38 }
 0x148   : > { %v779_v5 = vrot.slane %v778_v1, 4  ;;  %v770_v7 = vrot.slane %v769_v2, 4 }
 0x149   : > { %v762_v53 = vadd.f32 %v761_v3, %v760_v62  ;;  %v788_v8 = vrot.slane %v787_v4, 4  ;;  %v827_v51 = vsub.s32 %v824_v43, %v826_v44 }
 0x14a   : > { %v780_v9 = vadd.f32 %v779_v5, %v778_v1  ;;  %v771_v10 = vadd.f32 %v770_v7, %v769_v2 }
 0x14b   : > { %v763_v11 = vrot.slane %v762_v53, 2  ;;  %v789_v12 = vadd.f32 %v788_v8, %v787_v4 }
 0x14c   : > { %v781_v13 = vrot.slane %v780_v9, 2  ;;  %v772_v14 = vrot.slane %v771_v10, 2 }
 0x14d   : > { %v764_v15 = vadd.f32 %v763_v11, %v762_v53  ;;  %v790_v16 = vrot.slane %v789_v12, 2 }
 0x14e   : > { %v782_v17 = vadd.f32 %v781_v13, %v780_v9  ;;  %v773_v18 = vadd.f32 %v772_v14, %v771_v10 }
 0x14f   : > { %v765_v19 = vrot.slane %v764_v15, 1  ;;  %v791_v20 = vadd.f32 %v790_v16, %v789_v12 }
 0x150   : > { %v783_v22 = vrot.slane %v782_v17, 1  ;;  %v774_v23 = vrot.slane %v773_v18, 1 }
 0x151   : > { %v766_v24 = vadd.f32 %v765_v19, %v764_v15  ;;  %v792_v25 = vrot.slane %v791_v20, 1 }
 0x152   : > { %v784_v26 = vadd.f32 %v783_v22, %v782_v17  ;;  %v775_v27 = vadd.f32 %v774_v23, %v773_v18 }
 0x153   : > { %v796_v28 = vadd.f32 %v795_v21, %v766_v24  ;;  %v793_v29 = vadd.f32 %v792_v25, %v791_v20 }
 0x154   : > { %v798_v30 = vadd.f32 %v795_v21, %v784_v26  ;;  %v797_v31 = vadd.f32 %v795_v21, %v775_v27 }
 0x155   : > { %v800_v32 = vmul.f32 0.5, %v796_v28  ;;  %v799_v33 = vadd.f32 %v795_v21, %v793_v29 }
 0x156   : > { %v802_v34 = vmul.f32 0.5, %v798_v30  ;;  %v801_v35 = vmul.f32 0.5, %v797_v31 }
 0x157   : > { %1228 = vtanh.f32 %v800_v32  ;;  %v803_v36 = vmul.f32 0.5, %v799_v33 }
 0x158   : > { %1230 = vtanh.f32 %v802_v34 }
 0x159   : > { %1232 = vtanh.f32 %v801_v35 }
 0x15a   : > { %1234 = vtanh.f32 %v803_v36 }
 0x161   : > { %v1229_v40 = vpop.eup %1228 }
 0x162   : > { %v1231_v41 = vpop.eup %1230  ;;  %v808_v42 = vadd.f32 1.0, %v1229_v40 }
 0x163   : > { %v1233_v45 = vpop.eup %1232  ;;  %v810_v46 = vadd.f32 1.0, %v1231_v41 }
 0x164   : > { %v1235_v0 = vpop.eup %1234  ;;  %v809_v6 = vadd.f32 1.0, %v1233_v45  ;;  %v812_v48 = vmul.f32 0.5, %v808_v42 }
 0x165   : > { %v811_v49 = vadd.f32 1.0, %v1235_v0  ;;  %v814_v47 = vmul.f32 0.5, %v810_v46 }
 0x166   : > { %v813_v50 = vmul.f32 0.5, %v809_v6 }
 0x167   : > { %v815_v52 = vmul.f32 0.5, %v811_v49 }
 0x168   : > { %v820_v54 = vcombine.low %v812_v48, %v813_v50 }
 0x169   : > { %v821_v55 = vcombine.low %v814_v47, %v815_v52 }
 0x16a   : > { %v828_v56 = vrot.slane %v820_v54, %v827_v51 }
 0x16b   : > { %v835_v57 = vrot.slane %v821_v55, %v827_v51 }
 0x16d   : > { %v836_v58 = vcombine.low %v828_v56, %v835_v57 }
 0x16f   : > { %v843_v59 = vrot.slane %v836_v58, %v827_v51 }
 0x171   : > { %849 = vst.msk [vmem:[%s219_s26] sm:$0xf] %vm847_vm2, %v843_v59 }
 0x172   : > { %1249 = shalt.err (!%p1246_p3)
}
 0x173   : > { %s1250_s6 = scalar_lea.hbm %s1587_s9, 64  ;;  %s1254_s17 = scalar_lea.hbm %s1634_s5, 256 }
 0x174   : > { %p1251_p4 = scmp.ne.s32.totalorder %s1587_s9, %s1250_s6  ;;  %p1255_p9 = scmp.lt.u32.totalorder %s1587_s9, %s1634_s5 }
 0x175   : > { %p1256_p10 = scmp.lt.u32.totalorder %s1254_s17, %s1250_s6  ;;  %p1258_p12 = scmp.lt.u32.totalorder %s1250_s6, %s1587_s9 }
 0x176   : > { %p1252_p7 = pnand %p1251_p4, %p1371_p5 }
 0x177   : > { %p1257_p11 = por %p1256_p10, %p1255_p9 }
 0x178   : > { %p1253_p8 = pneg %p1252_p7 }
 0x179   : > { %p1259_p13 = por %p1258_p12, %p1257_p11 }
 0x17b   : > { %p1260_p0 = pnand %p1259_p13, %p1253_p8 }
 0x17d   : > { %1263 = shalt.err (!%p1260_p0)
}
 0x17e   : > { %1185 = dma.vmem_to_hbm [thread:$0]  (%p1371_p5), %s1589_s27, 64, %s1587_s9, %s851_s10  }
 0x17f PF: > { %p1191_p1 = scmp.ge.s32.totalorder %s1298_s23, 2  ;;  %s877_s4 = sand.u32 1, %s1286_s20  }
 0x180   : > { %s878_s24 = scalar_lea.sflag [#allocation4], %s877_s4 }
 0x181   : > { %p1188_p2 = pnand %p1191_p1, %p1375_p6 }
 0x183   : > { %1281 = dma.done.wait (!%p1188_p2), %s878_s24, 64  }
 0x184   : > { %1283 = vsyncadd (!%p1188_p2), %s878_s24, 4294967232  ;;  %p16_p3 = scmp.ge.s32.totalorder %s1359_s25, 6   ;;  %s1639_s20 = smov %s1290_s21 }
 0x185   : > { %s1640_s21 = smov %s1294_s22  ;;  %s1641_s22 = smov %s1369_s28 }
 0x186   : > { %s1642_s23 = smov %s1359_s25  ;;  %18 = sbr.rel (!%p16_p3) target bundleno = 5 (0x5), region = 75 }
 0x18d   :  { %883 = vsyncpa [#allocation4], 1 }
 0x18e   :  { %885 = vsyncpa [#allocation4 + $0x1], 1 }

</bundles_post_ra>
